<compile_context>
chip_gen: v7x
topology: tpu7x:2x2x1
jax: 0.10.0
libtpu: 0.0.40
codegen_flags: <defaults>
</compile_context>

<pallas_src>
import jax
import jax.numpy as jnp
from jax import lax
from jax.experimental import pallas as pl
from jax.experimental.pallas import tpu as pltpu

BN_EPS = 1e-5


def _round_up(a, m):
    return ((a + m - 1) // m) * m


def _vmem_limit(est_bytes):
    # Generous headroom (v5e default scoped VMEM is only 16 MiB), capped so an
    # oversized request never overshoots v7x's 64 MiB physical VMEM.
    return int(min(max(2 * est_bytes + (4 << 20), 16 << 20), 48 << 20))


# ----------------------------------------------------------------------------
# Kernel 1: tiled per-segment sum over N.
#   grid = (n_splits, tiles_per_split); split axis "parallel" (v7x: 2 TCs),
#   tile axis "arbitrary" (reduction).  Output (n_splits, B, C) f32 partial sums,
#   accumulated directly in the resident output block.
# ----------------------------------------------------------------------------
def _make_segment_sum_kernel(n_rows, tm, tiles_per_split):
    def kernel(x_ref, starts_ref, ends_ref, part_ref):
        s = pl.program_id(0)
        k = pl.program_id(1)

        @pl.when(k == 0)
        def _():
            part_ref[...] = jnp.zeros_like(part_ref)

        # Unclamped global tile index (the DMA index_map clamps separately); rows past
        # n_rows (ragged last tile / overshoot tiles of the last split) are masked out.
        tile = s * tiles_per_split + k
        rowid = tile * tm + lax.broadcasted_iota(jnp.int32, (tm, 1), 0)      # (tm, 1)
        col = tile * tm + lax.broadcasted_iota(jnp.int32, (1, tm), 1)        # (1, tm)

        x = jnp.where(rowid < n_rows, x_ref[...], 0)                         # kill garbage
        onehot_t = jnp.logical_and(col >= starts_ref[...],
                                   col < ends_ref[...]).astype(x.dtype)      # (B, tm)
        part_ref[...] += jnp.dot(onehot_t, x,
                                 preferred_element_type=jnp.float32)[None]   # segment sums
    return kernel


# ----------------------------------------------------------------------------
# Kernel 2: per-point gather of y2 + linear1 (BN pre-folded) + ReLU, tiled over N.
#   concat([x, g], -1) @ W1'^T  ==  x @ W1a'^T + g @ W1b'^T   (W1' split on input dim)
#   Ragged last tile: out-of-range rows are simply not written back by Pallas.
# ----------------------------------------------------------------------------
def _make_fuse_linear1_kernel(tm):
    def kernel(x_ref, starts_ref, ends_ref, y2_ref, w1at_ref, w1bt_ref, b1_ref, out_ref):
        row = pl.program_id(0) * tm + lax.broadcasted_iota(jnp.int32, (tm, 1), 0)
        onehot = jnp.logical_and(row >= starts_ref[...],
                                 row < ends_ref[...]).astype(jnp.float32)      # (tm, B)
        g = jnp.dot(onehot, y2_ref[...], preferred_element_type=jnp.float32)   # gather (tm, C)
        z = (jnp.dot(x_ref[...].astype(w1at_ref.dtype), w1at_ref[...],
                     preferred_element_type=jnp.float32)
             + jnp.dot(g.astype(w1bt_ref.dtype), w1bt_ref[...],
                       preferred_element_type=jnp.float32)
             + b1_ref[...])                                                    # linear1 (BN folded)
        out_ref[...] = jnp.maximum(z, 0.0).astype(out_ref.dtype)               # ReLU
    return kernel


def transition_up(x, offsets, params, *, tm=None, compute_dtype=jnp.bfloat16,
                  out_dtype=None, n_splits=1):
    """TransitionUp forward (pxo2 is None, out_planes=None).

    x             : (N, C) point features (streamed in its own dtype; pass bf16 for the
                    halved-HBM production path)
    offsets       : (B,)   int32 cumulative segment end offsets (like PyTorch `o`)
    params        : dict of weights (see init_params)
    tm            : point-tile rows per grid step; None -> auto (~1.5 MiB tile, x256)
    compute_dtype : dtype of the resident linear1 weights / MXU inputs (f32 acc kept)
    out_dtype     : output dtype (None -> x.dtype)
    n_splits      : split pass-1 reduction across TensorCores (set 2 on v7x)
    """
    N, C = x.shape
    B = offsets.shape[0]
    offsets = offsets.astype(jnp.int32)
    out_dtype = x.dtype if out_dtype is None else out_dtype

    x_bytes = jnp.dtype(x.dtype).itemsize
    out_bytes = jnp.dtype(out_dtype).itemsize
    w_bytes = jnp.dtype(compute_dtype).itemsize

    # ---- tile-size selection (sweepable) ----
    if tm is None:
        tm = (3 << 19) // max(1, C * max(x_bytes, out_bytes))   # ~1.5 MiB streamed tile
        tm = max(256, min(4096, (tm // 256) * 256))              # MXU-aligned (v6e/v7x)
    tm = max(8, (int(tm) // 8) * 8)
    tm = min(tm, _round_up(max(N, 8), 8))                        # no oversize tiles at small N

    n_tiles = (N + tm - 1) // tm
    n_splits = max(1, min(int(n_splits), n_tiles))
    tiles_per_split = (n_tiles + n_splits - 1) // n_splits

    starts = jnp.concatenate([jnp.zeros((1,), jnp.int32), offsets[:-1]])
    starts_col, ends_col = starts[:, None], offsets[:, None]     # (B, 1) for kernel 1
    starts_row, ends_row = starts[None, :], offsets[None, :]     # (1, B) for kernel 2

    # Fold BatchNorm1d into linear1 (one-time O(C^2) wrapper cost).
    scale = params["bn_gamma"] * lax.rsqrt(params["bn_rvar"] + BN_EPS)        # (C,)
    w1_fold = params["w1"] * scale[:, None]                                    # (C, 2C)
    b1_fold = (params["b1"] - params["bn_rmean"]) * scale + params["bn_beta"]  # (C,)
    w1at = w1_fold[:, :C].T.astype(compute_dtype)        # (C, C)  acts on x
    w1bt = w1_fold[:, C:].T.astype(compute_dtype)        # (C, C)  acts on gathered g
    b1 = b1_fold[None, :].astype(jnp.float32)            # (1, C)

    # ---- kernel 1: per-segment partial sums (split across TCs when n_splits > 1) ----
    if n_splits == 1:
        x_map1 = lambda s, k: (k, 0)
    else:
        x_map1 = lambda s, k: (jnp.minimum(s * tiles_per_split + k, n_tiles - 1), 0)
    bcast2 = lambda s, k: (0, 0)

    vmem1 = _vmem_limit(2 * tm * C * x_bytes + 2 * n_splits * B * C * 4 + 4 * B * 4)
    part = pl.pallas_call(
        _make_segment_sum_kernel(N, tm, tiles_per_split),
        out_shape=jax.ShapeDtypeStruct((n_splits, B, C), jnp.float32),
        grid=(n_splits, tiles_per_split),
        in_specs=[
            pl.BlockSpec((tm, C), x_map1),             # x tile (streamed)
            pl.BlockSpec((B, 1), bcast2),              # segment starts
            pl.BlockSpec((B, 1), bcast2),              # segment ends
        ],
        out_specs=pl.BlockSpec((1, B, C), lambda s, k: (s, 0, 0)),
        compiler_params=pltpu.CompilerParams(
            dimension_semantics=("parallel", "arbitrary"),
            vmem_limit_bytes=vmem1),
    )(x, starts_col, ends_col)

    # ---- tiny f32 epilogue in the wrapper: mean + linear2 + ReLU (B x C^2 flops) ----
    counts = (offsets - starts).astype(jnp.float32)
    inv_cnt = (1.0 / jnp.maximum(counts, 1.0))[:, None]           # guard empty segments
    mean = part.sum(axis=0) * inv_cnt                             # (B, C) f32
    y2 = jnp.maximum(mean @ params["w2"].T + params["b2"], 0.0)   # (B, C) f32 (no 2nd rounding)
    y2 = y2.astype(jnp.float32)

    # ---- kernel 2: gather + linear1(BN folded) + ReLU, tiled over points ----
    bcast1 = lambda i: (0, 0)
    vmem2 = _vmem_limit(2 * tm * C * x_bytes + 2 * tm * C * out_bytes
                        + 4 * C * C * w_bytes + 2 * B * C * 4 + 4 * C * 4)
    out = pl.pallas_call(
        _make_fuse_linear1_kernel(tm),
        out_shape=jax.ShapeDtypeStruct((N, C), out_dtype),
        grid=(n_tiles,),
        in_specs=[
            pl.BlockSpec((tm, C), lambda i: (i, 0)),   # x tile
            pl.BlockSpec((1, B), bcast1),              # segment starts
            pl.BlockSpec((1, B), bcast1),              # segment ends
            pl.BlockSpec((B, C), bcast1),              # y2 (small, resident, f32)
            pl.BlockSpec((C, C), bcast1),              # W1a'^T
            pl.BlockSpec((C, C), bcast1),              # W1b'^T
            pl.BlockSpec((1, C), bcast1),              # b1'
        ],
        out_specs=pl.BlockSpec((tm, C), lambda i: (i, 0)),
        compiler_params=pltpu.CompilerParams(
            dimension_semantics=("parallel",),
            vmem_limit_bytes=vmem2),
    )(x, starts_row, ends_row, y2, w1at, w1bt, b1)

    return out


def init_params(key, in_planes):
    """Deterministic parameter init matching TransitionUp(in_planes, out_planes=None)."""
    C = in_planes
    ks = jax.random.split(key, 8)
    return {
        # linear1: Linear(2C, C) + BatchNorm1d(C) + ReLU
        "w1": jax.random.normal(ks[0], (C, 2 * C), jnp.float32) * 0.1,
        "b1": jax.random.normal(ks[1], (C,), jnp.float32) * 0.1,
        "bn_gamma": 1.0 + 0.1 * jax.random.normal(ks[2], (C,), jnp.float32),
        "bn_beta": 0.1 * jax.random.normal(ks[3], (C,), jnp.float32),
        "bn_rmean": 0.1 * jax.random.normal(ks[4], (C,), jnp.float32),
        "bn_rvar": jnp.abs(1.0 + 0.1 * jax.random.normal(ks[5], (C,), jnp.float32)),
        # linear2: Linear(C, C) + ReLU
        "w2": jax.random.normal(ks[6], (C, C), jnp.float32) * 0.1,
        "b2": jax.random.normal(ks[7], (C,), jnp.float32) * 0.1,
    }


def _reference(x, offsets, params):
    """Pure-JAX reference replicating the PyTorch loop (eval-mode BatchNorm)."""
    outs = []
    o = [int(v) for v in offsets]
    for i in range(len(o)):
        s = 0 if i == 0 else o[i - 1]
        e = o[i]
        cnt = e - s
        xb = x[s:e]
        m = jnp.sum(xb, axis=0, keepdims=True) / cnt
        g = jnp.maximum(m @ params["w2"].T + params["b2"], 0.0)
        xb = jnp.concatenate([xb, jnp.tile(g, (cnt, 1))], axis=1)
        outs.append(xb)
    xc = jnp.concatenate(outs, axis=0)
    z = xc @ params["w1"].T + params["b1"]
    z = ((z - params["bn_rmean"]) / jnp.sqrt(params["bn_rvar"] + BN_EPS)
         * params["bn_gamma"] + params["bn_beta"])
    return jnp.maximum(z, 0.0)


if __name__ == "__main__":
    key = jax.random.PRNGKey(0)
    kx, kp = jax.random.split(key)

    in_planes = 16            # C
    n_points = 40             # N (two segments of 24 and 16 points)
    offsets = jnp.array([24, 40], dtype=jnp.int32)   # (b,) cumulative offsets

    x = jax.random.normal(kx, (n_points, in_planes), jnp.float32)
    params = init_params(kp, in_planes)
    ref = _reference(x, offsets, params)

    # 1) f32 streamed x, f32 compute (tight tolerance), auto tm.
    out_f32 = jax.block_until_ready(
        transition_up(x, offsets, params, compute_dtype=jnp.float32))
    assert out_f32.shape == (n_points, in_planes) and out_f32.dtype == jnp.float32
    assert jnp.allclose(out_f32, ref, atol=1e-4, rtol=1e-4), "f32 mismatch vs reference"

    # 2) bf16 streamed x / bf16 weights / bf16 out (halved-HBM production path), f32 acc.
    x_bf16 = x.astype(jnp.bfloat16)
    out_bf16 = jax.block_until_ready(transition_up(x_bf16, offsets, params))
    assert out_bf16.shape == (n_points, in_planes) and out_bf16.dtype == jnp.bfloat16
    assert jnp.allclose(out_bf16.astype(jnp.float32), ref, atol=1e-1, rtol=1e-1), \
        "bf16 mismatch vs reference"

    # 3) ragged tiles (tm does not divide N) + v7x-style 2-way split of pass 1.
    out_split = jax.block_until_ready(
        transition_up(x, offsets, params, tm=16, compute_dtype=jnp.float32, n_splits=2))
    assert out_split.shape == (n_points, in_planes)
    assert jnp.allclose(out_split, ref, atol=1e-4, rtol=1e-4), "split-path mismatch"

    print("KERNEL_OK")
</pallas_src>

<mosaic_0001>
module attributes {stable_mosaic.version = 11 : i64} {
  func.func @kernel(%arg0: i32, %arg1: i32, %arg2: memref<40x16xf32, #tpu.memory_space<vmem>>, %arg3: memref<2x1xi32, #tpu.memory_space<vmem>>, %arg4: memref<2x1xi32, #tpu.memory_space<vmem>>, %arg5: memref<1x2x16xf32, #tpu.memory_space<vmem>>) attributes {dimension_semantics = [#tpu.dimension_semantics<parallel>, #tpu.dimension_semantics<arbitrary>], iteration_bounds = array<i64: 1, 1>, scalar_prefetch = 0 : i64, scratch_operands = 0 : i64, tpu.core_type = #tpu.core_type<tc>, window_params = [{transform_indices = @transform_0, window_bounds = array<i64: 40, 16>}, {pipeline_mode = #tpu.pipeline_mode<synchronous>, transform_indices = @transform_1, window_bounds = array<i64: 2, 1>}, {pipeline_mode = #tpu.pipeline_mode<synchronous>, transform_indices = @transform_2, window_bounds = array<i64: 2, 1>}, {transform_indices = @transform_3, window_bounds = array<i64: 1, 2, 16>}]} {
    %c0_i32 = arith.constant 0 : i32
    %0 = arith.cmpi eq, %arg1, %c0_i32 : i32
    %1 = arith.extui %0 : i1 to i32
    %c0_i32_0 = arith.constant 0 : i32
    %2 = arith.cmpi ne, %1, %c0_i32_0 : i32
    scf.if %2 {
      %cst_15 = arith.constant 0.000000e+00 : f32
      %37 = vector.broadcast %cst_15 : f32 to vector<1x2x16xf32>
      %c0_16 = arith.constant 0 : index
      %c0_17 = arith.constant 0 : index
      %c0_18 = arith.constant 0 : index
      %38 = vector.load %arg5[%c0_16, %c0_17, %c0_18] : memref<1x2x16xf32, #tpu.memory_space<vmem>>, vector<1x2x16xf32>
      tpu.vector_store %arg5[%c0_16, %c0_17, %c0_18], %37 {strides = array<i32>} : memref<1x2x16xf32, #tpu.memory_space<vmem>>, vector<1x2x16xf32>,
    } else {
    }
    %c1_i32 = arith.constant 1 : i32
    %3 = arith.muli %arg0, %c1_i32 : i32
    %4 = arith.addi %3, %arg1 : i32
    %c40_i32 = arith.constant 40 : i32
    %5 = arith.muli %4, %c40_i32 : i32
    %6 = tpu.iota {dimensions = array<i32: 0>} : vector<40x1xi32>
    %7 = vector.broadcast %5 : i32 to vector<40x1xi32>
    %8 = arith.addi %7, %6 : vector<40x1xi32>
    %c40_i32_1 = arith.constant 40 : i32
    %9 = arith.muli %4, %c40_i32_1 : i32
    %10 = tpu.iota {dimensions = array<i32: 1>} : vector<1x40xi32>
    %11 = vector.broadcast %9 : i32 to vector<1x40xi32>
    %12 = arith.addi %11, %10 : vector<1x40xi32>
    %c40_i32_2 = arith.constant 40 : i32
    %13 = vector.broadcast %c40_i32_2 : i32 to vector<40x1xi32>
    %14 = arith.cmpi slt, %8, %13 : vector<40x1xi32>
    %c0 = arith.constant 0 : index
    %c0_3 = arith.constant 0 : index
    %15 = vector.load %arg2[%c0, %c0_3] : memref<40x16xf32, #tpu.memory_space<vmem>>, vector<40x16xf32>
    %c0_i32_4 = arith.constant 0 : i32
    %16 = arith.sitofp %c0_i32_4 : i32 to f32
    %17 = vector.shape_cast %14 : vector<40x1xi1> to vector<40x1xi1>
    %18 = vector.broadcast %17 : vector<40x1xi1> to vector<40x16xi1>
    %19 = vector.broadcast %16 : f32 to vector<40x16xf32>
    %20 = arith.select %18, %15, %19 : vector<40x16xi1>, vector<40x16xf32>
    %c0_5 = arith.constant 0 : index
    %c0_6 = arith.constant 0 : index
    %21 = vector.load %arg3[%c0_5, %c0_6] : memref<2x1xi32, #tpu.memory_space<vmem>>, vector<2x1xi32>
    %22 = vector.broadcast %12 : vector<1x40xi32> to vector<2x40xi32>
    %23 = vector.broadcast %21 : vector<2x1xi32> to vector<2x40xi32>
    %24 = arith.cmpi sge, %22, %23 : vector<2x40xi32>
    %c0_7 = arith.constant 0 : index
    %c0_8 = arith.constant 0 : index
    %25 = vector.load %arg4[%c0_7, %c0_8] : memref<2x1xi32, #tpu.memory_space<vmem>>, vector<2x1xi32>
    %26 = vector.broadcast %12 : vector<1x40xi32> to vector<2x40xi32>
    %27 = vector.broadcast %25 : vector<2x1xi32> to vector<2x40xi32>
    %28 = arith.cmpi slt, %26, %27 : vector<2x40xi32>
    %29 = arith.andi %24, %28 : vector<2x40xi1>
    %30 = arith.extui %29 : vector<2x40xi1> to vector<2x40xi32>
    %31 = arith.sitofp %30 : vector<2x40xi32> to vector<2x40xf32>
    %c0_9 = arith.constant 0 : index
    %c0_10 = arith.constant 0 : index
    %c0_11 = arith.constant 0 : index
    %32 = vector.load %arg5[%c0_9, %c0_10, %c0_11] : memref<1x2x16xf32, #tpu.memory_space<vmem>>, vector<1x2x16xf32>
    %cst = arith.constant dense<0.000000e+00> : vector<2x16xf32>
    %33 = tpu.matmul %31, %20, %cst {dimension_numbers = #tpu.dot_dimension_numbers<[1], [0], [0], [1], [0, 0, 1, 1], [], []>} : vector<2x40xf32>, vector<40x16xf32>, vector<2x16xf32> -> vector<2x16xf32>
    %34 = vector.shape_cast %33 : vector<2x16xf32> to vector<1x2x16xf32>
    %35 = arith.addf %32, %34 : vector<1x2x16xf32>
    %c0_12 = arith.constant 0 : index
    %c0_13 = arith.constant 0 : index
    %c0_14 = arith.constant 0 : index
    %36 = vector.load %arg5[%c0_12, %c0_13, %c0_14] : memref<1x2x16xf32, #tpu.memory_space<vmem>>, vector<1x2x16xf32>
    tpu.vector_store %arg5[%c0_12, %c0_13, %c0_14], %35 {strides = array<i32>} : memref<1x2x16xf32, #tpu.memory_space<vmem>>, vector<1x2x16xf32>,
    return
  }
  func.func @transform_0(%arg0: i32, %arg1: i32) -> (i32, i32) {
    %c0_i32 = arith.constant 0 : i32
    %c0_i32_0 = arith.constant 0 : i32
    return %arg1, %c0_i32 : i32, i32
  }
  func.func @transform_1(%arg0: i32, %arg1: i32) -> (i32, i32) {
    %c0_i32 = arith.constant 0 : i32
    %c0_i32_0 = arith.constant 0 : i32
    %c0_i32_1 = arith.constant 0 : i32
    return %c0_i32, %c0_i32_0 : i32, i32
  }
  func.func @transform_2(%arg0: i32, %arg1: i32) -> (i32, i32) {
    %c0_i32 = arith.constant 0 : i32
    %c0_i32_0 = arith.constant 0 : i32
    %c0_i32_1 = arith.constant 0 : i32
    return %c0_i32, %c0_i32_0 : i32, i32
  }
  func.func @transform_3(%arg0: i32, %arg1: i32) -> (i32, i32, i32) {
    %c0_i32 = arith.constant 0 : i32
    %c0_i32_0 = arith.constant 0 : i32
    %c0_i32_1 = arith.constant 0 : i32
    return %arg0, %c0_i32, %c0_i32_0 : i32, i32, i32
  }
}

</mosaic_0001>

<bundles_post_ra>
// kernel: tpu_custom_call.1
= control target key start
LH: loop header
LB: loop body
LE: loop exit
PB: predicated region body
PF: predicated region fallthrough
CT: control target
= control target key end

     0   :  { %v225_v1 = vmov 0   ;;  %v226_v2 = vmov 0.0|0.0   ;;  %s285_s0 = inlined_call_operand.vmem [shape: f32[40,16], index: 0, kind: input, shape index: {}]   ;;  %s286_s1 = inlined_call_operand.vmem [shape: s32[2,1], index: 1, kind: input, shape index: {}]   ;;  %s287_s2 = inlined_call_operand.vmem [shape: s32[2,1], index: 2, kind: input, shape index: {}]   ;;  %s288_s3 = inlined_call_operand.hbm [shape: f32[1,2,16], index: 3, kind: output, shape index: {}]  }
   0x1   :  { %v63_v0 = vld [vmem:[%s286_s1] sm:$0x3]  ;;  %200 = vset.pattern.permute.xlu0 %v225_v1  ;;  %189 = vmatprep.subr.bf16.mxu0 %v226_v2  ;;  %v44_v4 = vld [vmem:[%s285_s0 + $0x8] sm:$0xff]  ;;  %v45_v5 = vld [vmem:[%s285_s0 + $0x10] sm:$0xff] }
   0x2   :  { %v43_v3 = vld [vmem:[%s285_s0] sm:$0xff]  ;;  %65 = vperm.xlu0 %200, %v63_v0   ;;  %v46_v7 = vld [vmem:[%s285_s0 + $0x18] sm:$0xff] }
   0x3   :  { %v190_v6 = vpack.c.bf16 %v44_v4, %v43_v3 }
   0x4   :  { %8 = vsyncpa [#allocation3], 0  ;;  %v68_v8 = vld [vmem:[%s287_s2] sm:$0x3]  ;;  %v193_v9 = vpack.c.bf16 %v46_v7, %v45_v5  ;;  %vm19_vm0 = vcmask 123904   ;;  %v227_v10 = vmov 0.0   ;;  %v35_v12 = vlaneseq }
   0x5   :  { %191 = vmatpush3.bf16.msra.mxu0 %v190_v6  ;;  %20 = vst.msk [vmem:[#allocation2] sm:$0x3] %vm19_vm0, %v227_v10  ;;  %vm228_vm1 = vmmov 0   ;;  %v47_v11 = vld [vmem:[%s285_s0 + $0x20] sm:$0xff]  ;;  %vm77_vm4 = vcmask 326656   ;;  %s229_s2 = smov [#allocation2]  }
   0x6   :  { %192 = vmatprep.subr.bf16.mxu0 %v226_v2  ;;  %70 = vperm.xlu0 %200, %v68_v8   ;;  %v36_v14 = vand.u32 127, %v35_v12  ;;  %s160_s25 = sshll.u32 %s229_s2, 4  ;;  %s161_s25 = int_to_ptr.vmem [resolvable:$true] %s160_s25 }
   0x7   :  { %186 = vmatprep.mubr.msk.f32.mxu0 %vm228_vm1, %v227_v10  ;;  %s201_s0 = scalar_lea.vmem %s161_s25, 32  ;;  %p206_p1 = scmp.lt.s32.totalorder %s161_s25, %s161_s25 }
   0x8   :  { %p202_p0 = scmp.ne.s32.totalorder %s161_s25, %s201_s0  ;;  %p207_p2 = scmp.lt.s32.totalorder %s201_s0, %s201_s0 }
   0x9   :  { %194 = vmatpush3.bf16.msra.mxu0 %v193_v9 }
   0xa   :  { %184 = vmatprep.subr.mxu0 %v227_v10  ;;  %p208_p3 = por %p207_p2, %p206_p1 }
   0xc   :  { %v76_v17 = vld [vmem:[#allocation2] sm:$0x3]  ;;  %p209_p4 = pnand %p208_p3, %p202_p0 }
   0xd   :  { %185 = vmatpush3.msra.mxu0 %v47_v11 }
  0x81   :  { %v66_v13 = vpop.permute.xlu0 %65 }
  0x82   :  { %vm67_vm2 = vcmp.ge.s32.totalorder %v36_v14, %v66_v13 }
  0x85   :  { %v71_v15 = vpop.permute.xlu0 %70 }
  0x86   :  { %vm72_vm3 = vcmp.lt.s32.totalorder %v36_v14, %v71_v15 }
  0x87   :  { %vm73_vm5 = vmand %vm67_vm2, %vm72_vm3 }
  0x88   :  { %v168_v16 = vsel %vm73_vm5, 1.0, %v227_v10 }
  0x89   :  { %187 = vmatmul.mubr.msk.f32.vlgmr.msra.gmra.mrb[0].mxu0 %vm77_vm4, %v168_v16 }
 0x15c   :  { %v147_v18 = vpop.f32.mrb[0].mxu0 }
 0x15d   :  { %v151_v19 = vadd.f32 %v147_v18, %v76_v17  ;;  %v188_v20 = vpop.f32.mrb[1].mxu0 }
 0x15f   :  { %153 = vst.msk [vmem:[#allocation2] sm:$0x3] %vm19_vm0, %v151_v19 }
 0x160   :  { %212 = shalt.err (!%p209_p4)
}
 0x161   :  { %s213_s28 = scalar_lea.hbm %s288_s3, 32 }
 0x162   :  { %p214_p5 = scmp.ne.s32.totalorder %s288_s3, %s213_s28  ;;  %p217_p6 = scmp.lt.u32.totalorder %s213_s28, %s288_s3 }
 0x164   :  { %p219_p7 = pnand %p217_p6, %p214_p5 }
 0x166   :  { %222 = shalt.err (!%p219_p7)
}
 0x167   :  { %163 = dma.vmem_to_hbm [thread:$0]  %s161_s25, 32, %s288_s3, [#allocation3]  }
 0x168   :  { %223 = dma.done.wait [#allocation3], 32  }
 0x169   :  { %224 = vsyncadd [#allocation3], 4294967264 }
 0x16a   :  { %167 = vsyncpa [#allocation3], 1 }

</bundles_post_ra>
